<compile_context>
chip_gen: v7x
topology: tpu7x:2x2x1
jax: 0.10.0
libtpu: 0.0.40
codegen_flags: <defaults>
</compile_context>

<pallas_src>
import jax
import jax.numpy as jnp
from jax.experimental import pallas as pl
from jax.experimental.pallas import tpu as pltpu

_LANES = 128
_TARGET_BLOCK_BYTES = 4 * 1024 * 1024   # per input per pipeline buffer
_VMEM_LIMIT_BYTES = 40 * 1024 * 1024    # < v7x 64 MiB physical, leaves headroom


def _cdiv(a: int, b: int) -> int:
    return -(-a // b)


def _sublane_pack(dtype) -> int:
    # Sublane packing factor: f32 -> 8, bf16/f16 -> 16, int8/fp8 -> 32.
    return {1: 32, 2: 16, 4: 8}.get(jnp.dtype(dtype).itemsize, 8)


def _default_num_parallel() -> int:
    # Only v7x has 2 TensorCores per chip; on single-TC v5e/v6e an artificial
    # parallel split just adds mask work and a wasted ghost-block DMA.
    try:
        kind = jax.devices()[0].device_kind.lower()
    except Exception:
        return 1
    return 2 if ("v7" in kind or "tpu7" in kind) else 1


def _make_kernel(delta: float, rows: int, tile_rows: int, row_blocks: int,
                 inner: int, needs_tail_mask: bool, needs_ghost_guard: bool,
                 approx_reciprocal: bool):
    delta = float(delta)   # Python float -> literal in the kernel (no capture)

    def compute_diff(o_ref, t_ref):
        o = o_ref[...].astype(jnp.float32)
        t = t_ref[...].astype(jnp.float32)
        # |o/(t+d) - t/(t+d)| == |o - t| * (1/(t+d)); reciprocal runs on the
        # EUP (its own VLIW slot) instead of a multi-op VALU divide.
        inv = pl.reciprocal(t + delta, approx=approx_reciprocal)
        return jnp.abs(o - t) * inv

    def kernel(o_ref, t_ref, acc_ref):
        p = pl.program_id(0)     # megacore ("parallel") axis
        i = pl.program_id(1)     # streaming reduction axis ("arbitrary")

        @pl.when(i == 0)
        def _():
            acc_ref[...] = jnp.zeros_like(acc_ref)

        def accumulate(d):
            # (tile_rows,128) -> (tile_rows//8, 8, 128) follows vreg
            # boundaries, so the reduction is pure per-vreg VPU adds into a
            # single (8,128) accumulator vreg.
            acc_ref[0] += d.reshape(tile_rows // 8, 8, _LANES).sum(axis=0)

        if not (needs_tail_mask or needs_ghost_guard):
            # Fast path: every block is full and real -> no mask work at all.
            accumulate(compute_diff(o_ref, t_ref))
        else:
            blk = p * inner + i
            last_real = row_blocks - 1

            # Interior blocks: unmasked accumulate.
            @pl.when(blk < last_real)
            def _():
                accumulate(compute_diff(o_ref, t_ref))

            # Last real block: mask rows past the end of the slab (overhang).
            @pl.when(blk == last_real)
            def _():
                d = compute_diff(o_ref, t_ref)
                if needs_tail_mask:
                    row_ids = jax.lax.broadcasted_iota(
                        jnp.int32, (tile_rows, _LANES), 0) + last_real * tile_rows
                    # Select (not multiply): garbage/NaN overhang rows vanish.
                    d = jnp.where(row_ids < rows, d, 0.0)
                accumulate(d)

            # Ghost blocks (blk > last_real): skip compute entirely; their DMA
            # is clamped to a valid block by the index map.

    return kernel


def norm_l1_loss(output: jax.Array, target: jax.Array, delta: float = 1.0,
                 *, num_parallel: int | None = None,
                 block_rows: int | None = None,
                 approx_reciprocal: bool = True) -> jax.Array:
    """Pallas TPU implementation of NormL1Loss.forward(output, target)."""
    assert output.shape == target.shape, "output/target must have the same shape"
    if output.dtype != target.dtype:
        common = jnp.promote_types(output.dtype, target.dtype)
        output = output.astype(common)
        target = target.astype(common)
    delta = float(delta)
    n_true = int(output.size)
    if n_true == 0:
        return jnp.float32(jnp.nan)

    itemsize = jnp.dtype(output.dtype).itemsize
    pack = _sublane_pack(output.dtype)
    align = pack * _LANES

    # Kernel handles the aligned prefix; the small (< pack*128 element) tail is
    # folded in with plain jnp -- no full-tensor pad/copy through HBM.
    n_main = (n_true // align) * align

    flat_o = jnp.ravel(output)
    flat_t = jnp.ravel(target)

    if n_main < n_true:
        to = flat_o[n_main:].astype(jnp.float32)
        tt = flat_t[n_main:].astype(jnp.float32)
        tail_sum = jnp.sum(jnp.abs(to - tt) / (tt + delta))
    else:
        tail_sum = jnp.float32(0.0)

    if n_main == 0:
        return tail_sum / n_true

    rows = n_main // _LANES                      # multiple of `pack`
    o2d = flat_o[:n_main].reshape(rows, _LANES)  # lane-dense slab, native dtype
    t2d = flat_t[:n_main].reshape(rows, _LANES)

    # ~4 MiB per input per pipeline buffer (double-buffered: 16 MiB total).
    if block_rows is None:
        tile_rows = _TARGET_BLOCK_BYTES // (_LANES * itemsize)
    else:
        tile_rows = int(block_rows)
    tile_rows = max(pack, (tile_rows // pack) * pack)
    tile_rows = min(tile_rows, rows)

    row_blocks = _cdiv(rows, tile_rows)
    n_par = num_parallel if num_parallel is not None else _default_num_parallel()
    n_par = max(1, min(int(n_par), row_blocks))
    inner = _cdiv(row_blocks, n_par)

    needs_tail_mask = (rows % tile_rows) != 0
    needs_ghost_guard = (n_par * inner) != row_blocks
    if needs_tail_mask:
        assert rows < 2 ** 31, "int32 row-mask requires fewer than 2**31 rows"

    if needs_ghost_guard:
        def in_map(p, i):
            # Clamp ghost blocks to a valid block; their compute is skipped.
            return (jnp.minimum(p * inner + i, row_blocks - 1), 0)
    else:
        def in_map(p, i):
            return (p * inner + i, 0)

    kernel = _make_kernel(delta, rows, tile_rows, row_blocks, inner,
                          needs_tail_mask, needs_ghost_guard, approx_reciprocal)

    cost = pl.CostEstimate(
        flops=6 * n_main,
        transcendentals=n_main,
        bytes_accessed=2 * n_main * itemsize + n_par * 8 * _LANES * 4,
    )

    partials = pl.pallas_call(
        kernel,
        out_shape=jax.ShapeDtypeStruct((n_par, 8, _LANES), jnp.float32),
        grid_spec=pltpu.PrefetchScalarGridSpec(
            num_scalar_prefetch=0,
            grid=(n_par, inner),
            in_specs=[
                pl.BlockSpec((tile_rows, _LANES), in_map),
                pl.BlockSpec((tile_rows, _LANES), in_map),
            ],
            # Output doubles as the per-core accumulator (resident across i).
            out_specs=pl.BlockSpec((1, 8, _LANES), lambda p, i: (p, 0, 0)),
        ),
        compiler_params=pltpu.CompilerParams(
            dimension_semantics=("parallel", "arbitrary"),
            vmem_limit_bytes=_VMEM_LIMIT_BYTES,
        ),
        cost_estimate=cost,
    )(o2d, t2d)

    # Tiny final cross-lane reduce + mean in the wrapper.
    return (jnp.sum(partials) + tail_sum) / n_true


def _reference_norm_l1_loss(output, target, delta=1.0):
    output = output.astype(jnp.float32)
    target = target.astype(jnp.float32)
    denom = target + jnp.float32(delta)
    return jnp.mean(jnp.abs(output / denom - target / denom))


if __name__ == "__main__":
    key = jax.random.PRNGKey(0)
    ks = jax.random.split(key, 8)

    # 1) Primary: NCHW f32, size aligned to 8*128 -> fully unmasked fast path.
    out1 = jax.random.normal(ks[0], (2, 4, 16, 16), dtype=jnp.float32)
    tgt1 = jax.random.uniform(ks[1], (2, 4, 16, 16), dtype=jnp.float32,
                              minval=0.0, maxval=2.0)
    l1 = jax.block_until_ready(norm_l1_loss(out1, tgt1, delta=1.0))
    r1 = _reference_norm_l1_loss(out1, tgt1, 1.0)
    assert jnp.allclose(l1, r1, rtol=5e-3, atol=1e-5), (l1, r1)

    # 2) Ragged size: kernel on the aligned prefix + jnp tail (no pad copy).
    out2 = jax.random.normal(ks[2], (3, 5, 33, 17), dtype=jnp.float32)
    tgt2 = jax.random.uniform(ks[3], (3, 5, 33, 17), dtype=jnp.float32,
                              minval=0.5, maxval=2.0)
    l2 = jax.block_until_ready(norm_l1_loss(out2, tgt2, delta=0.5))
    r2 = _reference_norm_l1_loss(out2, tgt2, 0.5)
    assert jnp.allclose(l2, r2, rtol=5e-3, atol=1e-5), (l2, r2)

    # 3) bf16 inputs: native-dtype DMA, f32 accumulation inside the kernel.
    out3 = jax.random.normal(ks[4], (4, 8, 64, 64), dtype=jnp.float32).astype(jnp.bfloat16)
    tgt3 = jax.random.uniform(ks[5], (4, 8, 64, 64), dtype=jnp.float32,
                              minval=0.0, maxval=2.0).astype(jnp.bfloat16)
    l3 = jax.block_until_ready(norm_l1_loss(out3, tgt3, delta=1.0))
    r3 = _reference_norm_l1_loss(out3, tgt3, 1.0)
    assert jnp.allclose(l3, r3, rtol=5e-3, atol=1e-5), (l3, r3)

    # 4) Forced multi-block with overhang + ghost block (predicated mask path
    #    and 2-way "parallel" split; correct on any chip generation).
    out4 = jax.random.normal(ks[6], (10, 64, 64), dtype=jnp.float32)
    tgt4 = jax.random.uniform(ks[7], (10, 64, 64), dtype=jnp.float32,
                              minval=0.25, maxval=2.0)
    l4 = jax.block_until_ready(
        norm_l1_loss(out4, tgt4, delta=1.0, num_parallel=2, block_rows=128))
    r4 = _reference_norm_l1_loss(out4, tgt4, 1.0)
    assert jnp.allclose(l4, r4, rtol=5e-3, atol=1e-5), (l4, r4)

    print("KERNEL_OK")
</pallas_src>

<mosaic_0001>
module attributes {stable_mosaic.version = 11 : i64} {
  func.func @kernel(%arg0: i32, %arg1: i32, %arg2: memref<16x128xf32, #tpu.memory_space<vmem>>, %arg3: memref<16x128xf32, #tpu.memory_space<vmem>>, %arg4: memref<1x8x128xf32, #tpu.memory_space<vmem>>) attributes {dimension_semantics = [#tpu.dimension_semantics<parallel>, #tpu.dimension_semantics<arbitrary>], iteration_bounds = array<i64: 1, 1>, scalar_prefetch = 0 : i64, scratch_operands = 0 : i64, tpu.core_type = #tpu.core_type<tc>, window_params = [{transform_indices = @transform_0, window_bounds = array<i64: 16, 128>}, {transform_indices = @transform_1, window_bounds = array<i64: 16, 128>}, {transform_indices = @transform_2, window_bounds = array<i64: 1, 8, 128>}]} {
    %c0_i32 = arith.constant 0 : i32
    %0 = arith.cmpi eq, %arg1, %c0_i32 : i32
    %1 = arith.extui %0 : i1 to i32
    %c0_i32_0 = arith.constant 0 : i32
    %2 = arith.cmpi ne, %1, %c0_i32_0 : i32
    scf.if %2 {
      %cst_11 = arith.constant 0.000000e+00 : f32
      %19 = vector.broadcast %cst_11 : f32 to vector<1x8x128xf32>
      %c0_12 = arith.constant 0 : index
      %c0_13 = arith.constant 0 : index
      %c0_14 = arith.constant 0 : index
      %20 = vector.load %arg4[%c0_12, %c0_13, %c0_14] : memref<1x8x128xf32, #tpu.memory_space<vmem>>, vector<1x8x128xf32>
      tpu.vector_store %arg4[%c0_12, %c0_13, %c0_14], %19 {strides = array<i32>} : memref<1x8x128xf32, #tpu.memory_space<vmem>>, vector<1x8x128xf32>,
    } else {
    }
    %c0 = arith.constant 0 : index
    %c0_1 = arith.constant 0 : index
    %3 = vector.load %arg2[%c0, %c0_1] : memref<16x128xf32, #tpu.memory_space<vmem>>, vector<16x128xf32>
    %c0_2 = arith.constant 0 : index
    %c0_3 = arith.constant 0 : index
    %4 = vector.load %arg3[%c0_2, %c0_3] : memref<16x128xf32, #tpu.memory_space<vmem>>, vector<16x128xf32>
    %cst = arith.constant 1.000000e+00 : f32
    %5 = vector.broadcast %cst : f32 to vector<16x128xf32>
    %6 = arith.addf %4, %5 : vector<16x128xf32>
    %7 = tpu.reciprocal %6 {approx = true} : vector<16x128xf32> -> vector<16x128xf32>
    %8 = arith.subf %3, %4 : vector<16x128xf32>
    %9 = math.absf %8 : vector<16x128xf32>
    %10 = arith.mulf %9, %7 : vector<16x128xf32>
    %c0_4 = arith.constant 0 : index
    %c0_5 = arith.constant 0 : index
    %c0_6 = arith.constant 0 : index
    %11 = vector.load %arg4[%c0_4, %c0_5, %c0_6] : memref<1x8x128xf32, #tpu.memory_space<vmem>>, vector<1x8x128xf32>
    %12 = vector.shape_cast %11 : vector<1x8x128xf32> to vector<8x128xf32>
    %13 = vector.shape_cast %10 : vector<16x128xf32> to vector<2x8x128xf32>
    %cst_7 = arith.constant dense<0.000000e+00> : vector<8x128xf32>
    %14 = vector.multi_reduction <add>, %13, %cst_7 [0] : vector<2x8x128xf32> to vector<8x128xf32>
    %15 = arith.addf %12, %14 : vector<8x128xf32>
    %c0_8 = arith.constant 0 : index
    %c0_9 = arith.constant 0 : index
    %c0_10 = arith.constant 0 : index
    %16 = vector.load %arg4[%c0_8, %c0_9, %c0_10] : memref<1x8x128xf32, #tpu.memory_space<vmem>>, vector<1x8x128xf32>
    %17 = vector.shape_cast %16 : vector<1x8x128xf32> to vector<8x128xf32>
    %18 = vector.shape_cast %15 : vector<8x128xf32> to vector<1x8x128xf32>
    tpu.vector_store %arg4[%c0_8, %c0_9, %c0_10], %18 {strides = array<i32>} : memref<1x8x128xf32, #tpu.memory_space<vmem>>, vector<1x8x128xf32>,
    return
  }
  func.func @transform_0(%arg0: i32, %arg1: i32) -> (i32, i32) {
    %c1_i32 = arith.constant 1 : i32
    %0 = arith.muli %arg0, %c1_i32 : i32
    %1 = arith.addi %0, %arg1 : i32
    %c0_i32 = arith.constant 0 : i32
    %c0_i32_0 = arith.constant 0 : i32
    return %1, %c0_i32 : i32, i32
  }
  func.func @transform_1(%arg0: i32, %arg1: i32) -> (i32, i32) {
    %c1_i32 = arith.constant 1 : i32
    %0 = arith.muli %arg0, %c1_i32 : i32
    %1 = arith.addi %0, %arg1 : i32
    %c0_i32 = arith.constant 0 : i32
    %c0_i32_0 = arith.constant 0 : i32
    return %1, %c0_i32 : i32, i32
  }
  func.func @transform_2(%arg0: i32, %arg1: i32) -> (i32, i32, i32) {
    %c0_i32 = arith.constant 0 : i32
    %c0_i32_0 = arith.constant 0 : i32
    %c0_i32_1 = arith.constant 0 : i32
    return %arg0, %c0_i32, %c0_i32_0 : i32, i32, i32
  }
}

</mosaic_0001>

<bundles_post_ra>
// kernel: tpu_custom_call.1
= control target key start
LH: loop header
LB: loop body
LE: loop exit
PB: predicated region body
PF: predicated region fallthrough
CT: control target
= control target key end

     0   :  { %7 = vsyncpa [#allocation3], 0  ;;  %s229_s0 = inlined_call_operand.hbm [shape: f32[16,128], index: 0, kind: input, shape index: {}]   ;;  %s230_s1 = inlined_call_operand.hbm [shape: f32[16,128], index: 1, kind: input, shape index: {}]   ;;  %s231_s2 = inlined_call_operand.hbm [shape: f32[1,8,128], index: 2, kind: output, shape index: {}]  }
   0x1   :  { %8 = vsyncpa [#allocation6], 0 }
   0x2   :  { %9 = vsyncpa [#allocation4], 0  ;;  %s173_s9 = smov [#allocation2]   ;;  %s101_s13 = scalar_lea.hbm %s229_s0, 256 }
   0x3   :  { %s19_s10 = sshll.u32 %s173_s9, 4  ;;  %p102_p0 = scmp.ne.s32.totalorder %s229_s0, %s101_s13  ;;  %s20_s10 = int_to_ptr.vmem [resolvable:$true] %s19_s10 }
   0x4   :  { %p105_p1 = scmp.lt.u32.totalorder %s101_s13, %s229_s0 }
   0x6   :  { %p107_p2 = pnand %p105_p1, %p102_p0 }
   0x8   :  { %110 = shalt.err (!%p107_p2)
}
   0x9   :  { %s111_s18 = scalar_lea.vmem %s20_s10, 256  ;;  %p116_p4 = scmp.lt.s32.totalorder %s20_s10, %s20_s10 }
   0xa   :  { %p112_p3 = scmp.ne.s32.totalorder %s20_s10, %s111_s18  ;;  %p117_p5 = scmp.lt.s32.totalorder %s111_s18, %s111_s18 }
   0xc   :  { %p118_p6 = por %p117_p5, %p116_p4 }
   0xe   :  { %p119_p7 = pnand %p118_p6, %p112_p3 }
  0x10   :  { %122 = shalt.err (!%p119_p7)
}
  0x11   :  { %s174_s19 = smov 128   ;;  %s175_s20 = smov 8  }
  0x12   :  { %25 = dma.hbm_to_vmem [thread:$0]  %s229_s0, 256, %s20_s10, [#allocation3], %s174_s19, %s174_s19, %s175_s20  }
  0x13   :  { %s176_s23 = smov [#allocation5]   ;;  %s123_s27 = scalar_lea.hbm %s230_s1, 256 }
  0x14   :  { %s35_s24 = sshll.u32 %s176_s23, 4  ;;  %p124_p8 = scmp.ne.s32.totalorder %s230_s1, %s123_s27  ;;  %s36_s24 = int_to_ptr.vmem [resolvable:$true] %s35_s24 }
  0x15   :  { %p127_p9 = scmp.lt.u32.totalorder %s123_s27, %s230_s1 }
  0x17   :  { %p129_p10 = pnand %p127_p9, %p124_p8 }
  0x19   :  { %132 = shalt.err (!%p129_p10)
}
  0x1a   :  { %s133_s4 = scalar_lea.vmem %s36_s24, 256  ;;  %p138_p12 = scmp.lt.s32.totalorder %s36_s24, %s36_s24 }
  0x1b   :  { %p134_p11 = scmp.ne.s32.totalorder %s36_s24, %s133_s4  ;;  %p139_p13 = scmp.lt.s32.totalorder %s133_s4, %s133_s4 }
  0x1d   :  { %p140_p0 = por %p139_p13, %p138_p12 }
  0x1f   :  { %p141_p1 = pnand %p140_p0, %p134_p11 }
  0x21   :  { %144 = shalt.err (!%p141_p1)
}
  0x22   :  { %41 = dma.hbm_to_vmem [thread:$0]  %s230_s1, 256, %s36_s24, [#allocation6], %s174_s19, %s174_s19, %s175_s20  }
  0x23   :  { %167 = dma.done.wait [#allocation3], 256  }
  0x24   :  { %168 = vsyncadd [#allocation3], 4294967040 }
  0x25   :  { %169 = dma.done.wait [#allocation6], 256  }
  0x26   :  { %170 = vsyncadd [#allocation6], 4294967040  ;;  %v59_v0 = vld [vmem:[#allocation5] sm:$0xff]  ;;  %v60_v1 = vld [vmem:[#allocation5 + $0x8] sm:$0xff]  ;;  %s177_s1 = smov [#allocation7]  }
  0x27   :  { %v61_v2 = vadd.f32 1.0, %v59_v0  ;;  %v62_v3 = vadd.f32 1.0, %v60_v1  ;;  %v57_v4 = vld [vmem:[#allocation2] sm:$0xff]  ;;  %v58_v5 = vld [vmem:[#allocation2 + $0x8] sm:$0xff]  ;;  %s81_s6 = sshll.u32 %s177_s1, 4  ;;  %s82_s6 = int_to_ptr.vmem [resolvable:$true] %s81_s6 }
  0x28   :  { %v65_v6 = vsub.f32 %v57_v4, %v59_v0  ;;  %v66_v7 = vsub.f32 %v58_v5, %v60_v1  ;;  %s145_s7 = scalar_lea.vmem %s82_s6, 128  ;;  %p150_p3 = scmp.lt.s32.totalorder %s82_s6, %s82_s6 }
  0x29   :  { %97 = vrcp.f32 %v61_v2  ;;  %p146_p2 = scmp.ne.s32.totalorder %s82_s6, %s145_s7  ;;  %p151_p4 = scmp.lt.s32.totalorder %s145_s7, %s145_s7 }
  0x2a   :  { %99 = vrcp.f32 %v62_v3  ;;  %v67_v8 = vand.u32 2147483647, %v65_v6  ;;  %v68_v9 = vand.u32 2147483647, %v66_v7 }
  0x2b   :  { %p152_p5 = por %p151_p4, %p150_p3 }
  0x2d   :  { %p153_p6 = pnand %p152_p5, %p146_p2 }
  0x33   :  { %v98_v10 = vpop.eup %97 }
  0x34   :  { %v100_v11 = vpop.eup %99  ;;  %v69_v12 = vmul.f32 %v98_v10, %v67_v8 }
  0x35   :  { %v70_v13 = vmul.f32 %v100_v11, %v68_v9 }
  0x37   :  { %v72_v14 = vadd.f32 %v70_v13, %v69_v12 }
  0x39   :  { %74 = vst [vmem:[#allocation7] sm:$0xff] %v72_v14 }
  0x3a   :  { %156 = shalt.err (!%p153_p6)
}
  0x3b   :  { %s157_s10 = scalar_lea.hbm %s231_s2, 128 }
  0x3c   :  { %p158_p7 = scmp.ne.s32.totalorder %s231_s2, %s157_s10  ;;  %p161_p8 = scmp.lt.u32.totalorder %s157_s10, %s231_s2 }
  0x3e   :  { %p163_p9 = pnand %p161_p8, %p158_p7 }
  0x40   :  { %166 = shalt.err (!%p163_p9)
}
  0x41   :  { %84 = dma.vmem_to_hbm [thread:$0]  %s82_s6, 128, %s231_s2, [#allocation4]  }
  0x42   :  { %171 = dma.done.wait [#allocation4], 128  }
  0x43   :  { %172 = vsyncadd [#allocation4], 4294967168 }
  0x44   :  { %88 = vsyncpa [#allocation3], 1 }
  0x45   :  { %89 = vsyncpa [#allocation6], 1 }
  0x46   :  { %90 = vsyncpa [#allocation4], 1 }

</bundles_post_ra>
